<compile_context>
chip_gen: v6e
topology: v6e:2x2x1
jax: 0.10.0
libtpu: 0.0.40
codegen_flags: <defaults>
</compile_context>

<pallas_src>
import jax
import jax.numpy as jnp
from jax.experimental import pallas as pl

SEQ = 8          # S  (sequence length)
BATCH = 8        # B  (must equal S for the module's broadcast to be valid -- see note above)
D_MODEL = 32     # D  (embed dim)
MAX_LEN = 1024   # pe table rows (torch default max_len)


# ---------------- Pallas kernel ----------------
def _add_pe_kernel(x_ref, pe_ref, o_ref):
    # x_ref: (S, B*D), pe_ref: (1, B*D), o_ref: (S, B*D) -- all fully VMEM-resident.
    o_ref[...] = x_ref[...] + pe_ref[...]          # (1, N) row broadcasts over sublanes


# ---------------- wrapper ----------------
def learnable_positional_encoding(x_sbd, pe):
    """x_sbd: (S, B, D); pe: (max_len, 1, D). Returns (S, B, D)."""
    S, B, D = x_sbd.shape
    if B != S:
        # TODO(synk): the original forward's broadcast (pe[:x.size(1)] against the permuted
        # (B, S, D) tensor) only type-checks when batch == seq; mirror that restriction here.
        raise ValueError(f"module's pe broadcast requires batch == seq, got B={B}, S={S}")

    # Derived above: out[s, b, :] = x[s, b, :] + pe[b, 0, :].
    # Flatten (b, d) into the lane axis so flat column index b*D + d picks pe[b, 0, d].
    x2d = x_sbd.reshape(S, B * D)                  # contiguous reshape (no data movement)
    pe2d = pe[:S, 0, :].reshape(1, B * D)          # (1, B*D) broadcast row

    out2d = pl.pallas_call(
        _add_pe_kernel,
        out_shape=jax.ShapeDtypeStruct((S, B * D), x_sbd.dtype),
        # No grid: a single kernel invocation; whole slabs as single VMEM blocks.
        in_specs=[pl.BlockSpec((S, B * D), lambda: (0, 0)),
                  pl.BlockSpec((1, B * D), lambda: (0, 0))],
        out_specs=pl.BlockSpec((S, B * D), lambda: (0, 0)),
    )(x2d, pe2d)
    return out2d.reshape(S, B, D)


forward = jax.jit(learnable_positional_encoding)


# ---------------- pure-JAX literal reference (mirrors the torch forward line by line) ----------------
def ref_forward(x_sbd, pe):
    x = jnp.transpose(x_sbd, (1, 0, 2))            # x.permute(1, 0, 2)
    x = x + pe[:x.shape[1], :]                     # x + self.pe[:x.size(1), :]
    return jnp.transpose(x, (1, 0, 2))             # x.permute(1, 0, 2)


if __name__ == "__main__":
    key = jax.random.PRNGKey(0)
    k_x, k_pe = jax.random.split(key)

    # (S, B, D) input; pe parameter initialized like nn.init.uniform_(pe, -0.02, 0.02)
    x = jax.random.normal(k_x, (SEQ, BATCH, D_MODEL), jnp.float32)
    pe = jax.random.uniform(k_pe, (MAX_LEN, 1, D_MODEL), jnp.float32,
                            minval=-0.02, maxval=0.02)

    out = forward(x, pe)
    out = jax.block_until_ready(out)

    ref = ref_forward(x, pe)
    assert out.shape == (SEQ, BATCH, D_MODEL)
    assert jnp.max(jnp.abs(out - ref)) < 1e-6, "mismatch vs pure-JAX reference"

    print("KERNEL_OK")
</pallas_src>

<mosaic_0001>
module attributes {stable_mosaic.version = 11 : i64} {
  func.func @_add_pe_kernel(%arg0: memref<8x256xf32, #tpu.memory_space<vmem>>, %arg1: memref<1x256xf32, #tpu.memory_space<vmem>>, %arg2: memref<8x256xf32, #tpu.memory_space<vmem>>) attributes {dimension_semantics = [], scalar_prefetch = 0 : i64, scratch_operands = 0 : i64, tpu.core_type = #tpu.core_type<tc>} {
    %c0 = arith.constant 0 : index
    %c0_0 = arith.constant 0 : index
    %0 = vector.load %arg0[%c0, %c0_0] : memref<8x256xf32, #tpu.memory_space<vmem>>, vector<8x256xf32>
    %c0_1 = arith.constant 0 : index
    %c0_2 = arith.constant 0 : index
    %1 = vector.load %arg1[%c0_1, %c0_2] : memref<1x256xf32, #tpu.memory_space<vmem>>, vector<1x256xf32>
    %2 = vector.broadcast %1 : vector<1x256xf32> to vector<8x256xf32>
    %3 = arith.addf %0, %2 : vector<8x256xf32>
    %c0_3 = arith.constant 0 : index
    %c0_4 = arith.constant 0 : index
    %4 = vector.load %arg2[%c0_3, %c0_4] : memref<8x256xf32, #tpu.memory_space<vmem>>, vector<8x256xf32>
    tpu.vector_store %arg2[%c0_3, %c0_4], %3 {strides = array<i32>} : memref<8x256xf32, #tpu.memory_space<vmem>>, vector<8x256xf32>,
    return
  }
}

</mosaic_0001>

<bundles_post_ra>
// kernel: squeeze.1
= control target key start
LH: loop header
LB: loop body
LE: loop exit
PB: predicated region body
PF: predicated region fallthrough
CT: control target
= control target key end

     0   :  { %s7_s6 = smov 3  ;;  %s14_s9 = smov 3  ;;  %vm4_vm0 = vcmask 261120   ;;  %vm11_vm1 = vcmask 1048320   ;;  %vm18_vm2 = vcmask 785920   ;;  %vm25_vm3 = vcmask 523520   ;;  %s79_s0 = inlined_call_operand.vmem [shape: f32[8,1,32], index: 0, kind: input, shape index: {}]   ;;  %s80_s1 = inlined_call_operand.vmem [shape: f32[1,256], index: 1, kind: output, shape index: {}]  }
   0x1   :  { %v41_v0 = vld [vmem:[%s79_s0 + $0x3] ss:$4 sm:%s7_s6]   ;;  %s48_s10 = smov 96   ;;  %s21_s11 = smov 3  ;;  %v42_v1 = vld [vmem:[%s79_s0 + $0x2] ss:$4 sm:%s14_s9]  }
   0x2   :  { %9 = vrot.lane.b32.xlu0 %v41_v0, %s48_s10  ;;  %v43_v2 = vld [vmem:[%s79_s0 + $0x1] ss:$4 sm:%s21_s11]   ;;  %s2_s16 = smov 3  ;;  %s49_s17 = smov 32  }
   0x3   :  { %23 = vrot.lane.b32.xlu1 %v43_v2, %s49_s17  ;;  %v3_v3 = vld [vmem:[%s79_s0] ss:$4 sm:%s2_s16]   ;;  %s50_s0 = smov 64  }
   0x4   :  { %5 = vst.msk [vmem:[#allocation0] ss:$8 sm:$0x3] %vm4_vm0, %v3_v3  }
   0x6   :  { %16 = vrot.lane.b32.xlu0 %v42_v1, %s50_s0 }
  0x74   :  { %v10_v4 = vpop.permute.xlu0 %9  }
  0x75   :  { %12 = vst.msk [vmem:[#allocation0] ss:$8 sm:$0x3] %vm11_vm1, %v10_v4   ;;  %v24_v5 = vpop.permute.xlu1 %23  }
  0x78   :  { %v17_v6 = vpop.permute.xlu0 %16  }
  0x79   :  { %19 = vst.msk [vmem:[#allocation0] ss:$8 sm:$0x3] %vm18_vm2, %v17_v6  }
  0x7a   :  { %26 = vst.msk [vmem:[#allocation0] ss:$8 sm:$0x3] %vm25_vm3, %v24_v5  }
  0x81   :  { %v31_v7 = vld [vmem:[#allocation0] sm:$0x1]  ;;  %v36_v8 = vld [vmem:[#allocation0 + $0x8] sm:$0x1] }
  0x82   :  { %34 = vst [vmem:[%s80_s1] sm:$0x1] %v31_v7  ;;  %44 = vst [vmem:[%s80_s1 + $0x1] sm:$0x1] %v36_v8 }

// kernel: learnable_positional_encoding.1
= control target key start
LH: loop header
LB: loop body
LE: loop exit
PB: predicated region body
PF: predicated region fallthrough
CT: control target
= control target key end

     0   :  { %v15_v0 = vlaneseq  ;;  %s63_s1 = inlined_call_operand.vmem [shape: f32[1,256], index: 1, kind: input, shape index: {}]   ;;  %s64_s0 = inlined_call_operand.vmem [shape: f32[8,256], index: 0, kind: input, shape index: {}]   ;;  %s65_s2 = inlined_call_operand.vmem [shape: f32[8,256], index: 2, kind: output, shape index: {}]  }
   0x1   :  { %v13_v2 = vld [vmem:[%s63_s1] sm:$0x3]  ;;  %v12_v6 = vld [vmem:[%s64_s0 + $0x8] sm:$0xff] }
   0x2   :  { %v16_v1 = vshrl.u32 %v15_v0, 7  ;;  %v11_v5 = vld [vmem:[%s64_s0] sm:$0xff] }
   0x4   :  { %v17_v3 = vsub.s32 0, %v16_v1  ;;  %v21_v4 = vsub.s32 1, %v16_v1 }
   0x6   :  { %v18_v7 = vrot.slane %v13_v2, %v17_v3  ;;  %v22_v8 = vrot.slane %v13_v2, %v21_v4 }
   0x8   :  { %v25_v9 = vadd.f32 %v18_v7, %v11_v5  ;;  %v26_v10 = vadd.f32 %v22_v8, %v12_v6 }
   0xa   :  { %27 = vst [vmem:[%s65_s2] sm:$0xff] %v25_v9  ;;  %28 = vst [vmem:[%s65_s2 + $0x8] sm:$0xff] %v26_v10 }

</bundles_post_ra>
